<compile_context>
chip_gen: v6e
topology: v6e:2x2x1
jax: 0.10.0
libtpu: 0.0.40
codegen_flags: <defaults>
</compile_context>

<pallas_src>
import functools

import numpy as np
import jax
import jax.numpy as jnp
from jax.experimental import pallas as pl
from jax.experimental.pallas import tpu as pltpu

CORE_LOSS_KEY = "core_loss"

_N_STATS = 6  # rows: focal_sum, inter, prob_sum, tgt_sum, area_inter, pred_sum


# ----------------------------------------------------------------------------
# Pallas kernel: accumulate per-(object, multimask) statistics over one
# spatial chunk.  Grid = (T, S, K) with K = lane chunks (reduction axis).
# ----------------------------------------------------------------------------
def _mask_stats_kernel(src_ref, tgt_ref, out_ref, *, alpha, gamma):
    # src_ref: (N, M, F, C)  logits (f32 or bf16), F = 8 sublane fold
    # tgt_ref: (N, 1, F, C)  binary ground truth {0, 1}
    # out_ref: (6, N, M, F)  packed accumulator, resident across the k axis
    k = pl.program_id(2)

    @pl.when(k == 0)
    def _init():
        out_ref[...] = jnp.zeros_like(out_ref)

    x = src_ref[...].astype(jnp.float32)              # (N, M, F, C)
    t = tgt_ref[...].astype(jnp.float32)              # (N, 1, F, C)
    # Hoist the M-broadcast of the target once (JAX does not CSE
    # broadcast_in_dim, so per-op implicit broadcasts would each re-copy).
    # With lane chunking this single chunk-sized intermediate is cheap.
    tb = jnp.broadcast_to(t, x.shape)                 # (N, M, F, C)

    p = jax.nn.sigmoid(x)
    # Stable BCE-with-logits: log1p(exp(-|x|)) == -log(max(p, 1 - p)),
    # reusing the sigmoid -> 1 EUP log instead of exp + log1p.
    ce = jnp.maximum(x, 0.0) - x * tb - jnp.log(jnp.maximum(p, 1.0 - p))

    pt_prod = p * tb                                  # reused for dice inter
    p_t = pt_prod + (1.0 - p) * (1.0 - tb)
    one_m = 1.0 - p_t
    g = float(gamma)
    if g == 2.0:
        loss = ce * (one_m * one_m)
    elif g == 0.0:
        loss = ce
    else:
        loss = ce * (one_m ** g)
    a = float(alpha)
    if a >= 0.0:
        # alpha*t + (1-alpha)*(1-t) == (1-alpha) + (2*alpha - 1)*t
        loss = loss * ((1.0 - a) + (2.0 * a - 1.0) * tb)

    pm = (x > 0.0).astype(jnp.float32)                # thresholded prediction

    # Lane-axis partial reductions, accumulated into the packed output block.
    # Targets are exactly {0,1}: gt_mask == t; the union area is reconstructed
    # in the wrapper as pred_sum + tgt_sum - area_inter.
    out_ref[0] = out_ref[0] + jnp.sum(loss, axis=-1)       # focal (sum)
    out_ref[1] = out_ref[1] + jnp.sum(pt_prod, axis=-1)    # dice intersection
    out_ref[2] = out_ref[2] + jnp.sum(p, axis=-1)          # prob sum
    out_ref[3] = out_ref[3] + jnp.sum(t, axis=-1)          # tgt sum (bcast M)
    out_ref[4] = out_ref[4] + jnp.sum(pm * tb, axis=-1)    # |pred AND gt|
    out_ref[5] = out_ref[5] + jnp.sum(pm, axis=-1)         # |pred|


def _pick_lane_chunk(n_lanes, max_chunk):
    """Largest multiple of 128 that divides n_lanes and is <= max_chunk."""
    if n_lanes <= max_chunk or n_lanes % 128 != 0:
        return n_lanes                     # single full-width chunk
    c = (max_chunk // 128) * 128
    while c >= 128:
        if n_lanes % c == 0:
            return c
        c -= 128
    return n_lanes


def mask_stats_pallas(src, tgt, alpha, gamma, *, max_lane_chunk=2048):
    """Per-(object, multimask) spatial statistics.

    src: [T, S, N, M, HW] logits (f32 or bf16); tgt: [T, N, HW] binary {0,1}.
    Returns six f32 [T, S, N, M] arrays:
      focal (mean over HW), inter, prob_sum, tgt_sum, area_inter, area_union.
    """
    T, S, N, M, HW = src.shape
    fold = 8 if HW % 8 == 0 else 1         # fill the sublane axis when possible
    L = HW // fold                         # lanes per fold row

    # Cap the lane chunk so ~a dozen chunk-sized f32 intermediates stay well
    # under the scoped-VMEM default on every generation (incl. v7x's 64 MiB).
    budget_lanes = max(128, (24 * 1024 * 1024) // (12 * 4 * N * M * fold))
    chunk_cap = max(128, min(int(max_lane_chunk), budget_lanes))
    C = _pick_lane_chunk(L, chunk_cap)
    K = L // C

    # Contiguous (free) reshapes: fold 8 rows of HW into the sublane axis.
    src_p = src.reshape(T, S, N, M, fold, L)
    tgt_p = tgt.reshape(T, N, 1, fold, L).astype(jnp.float32)

    kernel = functools.partial(_mask_stats_kernel,
                               alpha=float(alpha), gamma=float(gamma))
    packed = pl.pallas_call(
        kernel,
        out_shape=jax.ShapeDtypeStruct((T, S, _N_STATS, N, M, fold),
                                       jnp.float32),
        grid=(T, S, K),
        in_specs=[
            pl.BlockSpec((None, None, N, M, fold, C),
                         lambda t, s, k: (t, s, 0, 0, 0, k)),
            pl.BlockSpec((None, N, 1, fold, C),
                         lambda t, s, k: (t, 0, 0, 0, k)),
        ],
        out_specs=pl.BlockSpec((None, None, _N_STATS, N, M, fold),
                               lambda t, s, k: (t, s, 0, 0, 0, 0)),
        compiler_params=pltpu.CompilerParams(
            dimension_semantics=("parallel", "parallel", "arbitrary")),
    )(src_p, tgt_p)

    sums = jnp.sum(packed, axis=-1)                    # [T, S, 6, N, M]
    focal = sums[:, :, 0] / float(HW)                  # mean over pixels
    inter = sums[:, :, 1]
    psum = sums[:, :, 2]
    tsum = sums[:, :, 3]
    area_i = sums[:, :, 4]
    area_u = sums[:, :, 5] + tsum - area_i             # union of binary masks
    return focal, inter, psum, tsum, area_i, area_u


# ----------------------------------------------------------------------------
# Pure-JAX glue reproducing MultiStepMultiMasksAndIousAndSemantic.forward
# ----------------------------------------------------------------------------
def multi_step_multi_masks_and_ious_and_semantic(
        src_masks,            # [T, S, N, M, H, W] logits
        pred_ious,            # [T, S, N, M]
        object_score_logits,  # [T, S, N, 1]
        sem_masks,            # [T, S, 1, 1, H, W] logits (or None)
        sem_ious,             # [T, S, 1, 1]             (or None)
        targets,              # [T, N, H, W]  binary
        targets_sem,          # [T, 1, H, W]  binary
        weight_dict,
        focal_alpha=0.25, focal_gamma=2.0,
        supervise_all_iou=False, iou_use_l1_loss=False,
        pred_obj_scores=False,
        focal_alpha_obj_score=-1.0, focal_gamma_obj_score=0.0):
    T, S, N, M, H, W = src_masks.shape
    HW = H * W
    # TODO(synk): torch.distributed all_reduce of num_objects (multi-host) is
    # not modeled; single-process semantics (world_size == 1) are reproduced.
    num_objects = max(float(N), 1.0)

    src_flat = src_masks.reshape(T, S, N, M, HW)       # keep dtype (f32/bf16)
    tgt_flat = targets.reshape(T, N, HW).astype(jnp.float32)

    focal, inter, psum, tsum, area_i, area_u = mask_stats_pallas(
        src_flat, tgt_flat, focal_alpha, focal_gamma)

    loss_multimask = focal / num_objects
    loss_multidice = (1.0 - (2.0 * inter + 1.0) / (psum + tsum + 1.0)) / num_objects
    actual_ious = area_i / jnp.maximum(area_u, 1.0)
    diff = pred_ious.astype(jnp.float32) - actual_ious
    loss_multiiou = (jnp.abs(diff) if iou_use_l1_loss else diff * diff) / num_objects

    if M > 1:
        combo = (loss_multimask * weight_dict['loss_mask']
                 + loss_multidice * weight_dict['loss_dice'])
        best = jnp.argmin(combo, axis=-1)                                  # [T, S, N]
        sel = lambda a: jnp.take_along_axis(a, best[..., None], axis=-1)[..., 0]
        loss_mask = sel(loss_multimask)
        loss_dice = sel(loss_multidice)
        loss_iou = loss_multiiou.mean(axis=-1) if supervise_all_iou else sel(loss_multiiou)
    else:
        loss_mask = loss_multimask[..., 0]
        loss_dice = loss_multidice[..., 0]
        loss_iou = loss_multiiou[..., 0]

    if pred_obj_scores:
        target_obj = jnp.any(tgt_flat > 0, axis=-1).astype(jnp.float32)    # [T, N]
        tgt_obj_ts = jnp.broadcast_to(target_obj[:, None, :], (T, S, N))
        osl = object_score_logits.astype(jnp.float32)                      # [T, S, N, 1]
        tob = tgt_obj_ts[..., None]
        ce = jnp.maximum(osl, 0.0) - osl * tob + jnp.log1p(jnp.exp(-jnp.abs(osl)))
        pp = jax.nn.sigmoid(osl)
        p_t = pp * tob + (1.0 - pp) * (1.0 - tob)
        g = float(focal_gamma_obj_score)
        loss_cls = ce if g == 0.0 else ce * (1.0 - p_t) ** g
        if focal_alpha_obj_score >= 0.0:
            loss_cls = (focal_alpha_obj_score * tob
                        + (1.0 - focal_alpha_obj_score) * (1.0 - tob)) * loss_cls
        loss_class_total = jnp.sum(jnp.mean(loss_cls, axis=-1)) / num_objects
    else:
        loss_class_total = jnp.float32(0.0)
        tgt_obj_ts = jnp.ones((T, S, N), jnp.float32)

    loss_mask = loss_mask * tgt_obj_ts
    loss_dice = loss_dice * tgt_obj_ts
    loss_iou = loss_iou * tgt_obj_ts

    losses = {
        'loss_mask': jnp.sum(loss_mask),
        'loss_dice': jnp.sum(loss_dice),
        'loss_iou': jnp.sum(loss_iou),
        'loss_class': loss_class_total,
    }

    if sem_masks is not None and sem_ious is not None:
        Ts, Ss, Ns, Ms, Hs, Ws = sem_masks.shape
        sem_src = sem_masks.reshape(Ts, Ss, Ns, Ms, Hs * Ws)
        # targets_semantic[0] -> first semantic channel, expanded to preds
        sem_tgt = targets_sem[:, 0:1].reshape(Ts, 1, Hs * Ws).astype(jnp.float32)
        sfoc, sint, spsum, stsum, sai, sau = mask_stats_pallas(
            sem_src, sem_tgt, focal_alpha, focal_gamma)
        # num_objects == 1 for the semantic branch
        l_sem_mask = sfoc
        l_sem_dice = 1.0 - (2.0 * sint + 1.0) / (spsum + stsum + 1.0)
        sact = sai / jnp.maximum(sau, 1.0)
        sdiff = sem_ious.astype(jnp.float32) - sact
        l_sem_iou = jnp.abs(sdiff) if iou_use_l1_loss else sdiff * sdiff
        losses['loss_semantic_mask'] = jnp.sum(l_sem_mask)
        losses['loss_semantic_dice'] = jnp.sum(l_sem_dice)
        losses['loss_semantic_iou'] = jnp.sum(l_sem_iou)
    else:
        z = jnp.float32(0.0)
        losses['loss_semantic_mask'] = z
        losses['loss_semantic_dice'] = z
        losses['loss_semantic_iou'] = z

    core = jnp.float32(0.0)
    for k, w in weight_dict.items():
        if w != 0:
            core = core + losses[k] * w
    losses[CORE_LOSS_KEY] = core
    return losses


# ----------------------------------------------------------------------------
# Pure-jnp reference of the per-mask statistics (correctness check).
# ----------------------------------------------------------------------------
def _ref_stats(src_flat, tgt_flat, alpha, gamma):
    x = src_flat.astype(jnp.float32)                      # [T,S,N,M,HW]
    t = jnp.broadcast_to(tgt_flat[:, None, :, None, :], x.shape)
    p = jax.nn.sigmoid(x)
    ce = jnp.maximum(x, 0.0) - x * t + jnp.log1p(jnp.exp(-jnp.abs(x)))
    p_t = p * t + (1 - p) * (1 - t)
    loss = ce * (1 - p_t) ** gamma
    loss = (alpha * t + (1 - alpha) * (1 - t)) * loss
    pm = (x > 0).astype(jnp.float32)
    gm = (t > 0).astype(jnp.float32)
    return (jnp.mean(loss, -1), jnp.sum(p * t, -1), jnp.sum(p, -1),
            jnp.sum(t, -1), jnp.sum(pm * gm, -1), jnp.sum(jnp.maximum(pm, gm), -1))


if __name__ == "__main__":
    key = jax.random.PRNGKey(0)
    T, S, N, M, H, W = 2, 2, 2, 3, 32, 32
    ks = jax.random.split(key, 8)

    src_masks = 2.0 * jax.random.normal(ks[0], (T, S, N, M, H, W), jnp.float32)
    pred_ious = jax.nn.sigmoid(jax.random.normal(ks[1], (T, S, N, M), jnp.float32))
    obj_logits = jax.random.normal(ks[2], (T, S, N, 1), jnp.float32)
    sem_masks = 2.0 * jax.random.normal(ks[3], (T, S, 1, 1, H, W), jnp.float32)
    sem_ious = jax.nn.sigmoid(jax.random.normal(ks[4], (T, S, 1, 1), jnp.float32))
    targets = (jax.random.uniform(ks[5], (T, N, H, W)) > 0.5).astype(jnp.float32)
    targets_sem = (jax.random.uniform(ks[6], (T, 1, H, W)) > 0.5).astype(jnp.float32)

    # Deterministic "parameters" of the module (no learnable weights exist).
    weight_dict = {
        'loss_mask': 20.0, 'loss_dice': 1.0, 'loss_iou': 1.0,
        'loss_semantic_mask': 20.0, 'loss_semantic_dice': 1.0,
        'loss_semantic_iou': 1.0, 'loss_class': 0.0,
    }

    losses = multi_step_multi_masks_and_ious_and_semantic(
        src_masks, pred_ious, obj_logits, sem_masks, sem_ious,
        targets, targets_sem, weight_dict,
        focal_alpha=0.25, focal_gamma=2.0,
        supervise_all_iou=False, iou_use_l1_loss=False,
        pred_obj_scores=False)
    losses = {k: jax.block_until_ready(v) for k, v in losses.items()}

    # Sanity check 1: Pallas per-mask statistics vs pure-jnp reference
    # (single lane chunk, K == 1).
    src_flat = src_masks.reshape(T, S, N, M, H * W)
    tgt_flat = targets.reshape(T, N, H * W)
    got = mask_stats_pallas(src_flat, tgt_flat, 0.25, 2.0)
    want = _ref_stats(src_flat, tgt_flat, 0.25, 2.0)
    for g, w in zip(got, want):
        np.testing.assert_allclose(np.asarray(g), np.asarray(w),
                                   rtol=1e-3, atol=1e-3)

    # Sanity check 2: force multiple lane chunks (exercises the K-axis
    # accumulator / pl.when init-finalize path).
    H2 = W2 = 64
    src2 = 2.0 * jax.random.normal(ks[7], (1, 1, 2, 3, H2, W2), jnp.float32)
    tgt2 = (jax.random.uniform(ks[5], (1, 2, H2, W2)) > 0.5).astype(jnp.float32)
    src2f = src2.reshape(1, 1, 2, 3, H2 * W2)
    tgt2f = tgt2.reshape(1, 2, H2 * W2)
    got2 = mask_stats_pallas(src2f, tgt2f, 0.25, 2.0, max_lane_chunk=128)
    want2 = _ref_stats(src2f, tgt2f, 0.25, 2.0)
    for g, w in zip(got2, want2):
        np.testing.assert_allclose(np.asarray(g), np.asarray(w),
                                   rtol=1e-3, atol=1e-3)

    print("KERNEL_OK")
</pallas_src>

<mosaic_0001>
module attributes {stable_mosaic.version = 11 : i64} {
  func.func @_mask_stats_kernel(%arg0: i32, %arg1: i32, %arg2: i32, %arg3: memref<1x1x2x3x8x128xf32, #tpu.memory_space<vmem>>, %arg4: memref<1x2x1x8x128xf32, #tpu.memory_space<vmem>>, %arg5: memref<1x1x6x2x3x8xf32, #tpu.memory_space<vmem>>) attributes {dimension_semantics = [#tpu.dimension_semantics<parallel>, #tpu.dimension_semantics<parallel>, #tpu.dimension_semantics<arbitrary>], iteration_bounds = array<i64: 2, 2, 1>, scalar_prefetch = 0 : i64, scratch_operands = 0 : i64, tpu.core_type = #tpu.core_type<tc>, window_params = [{transform_indices = @transform_0, window_bounds = array<i64: 1, 1, 2, 3, 8, 128>}, {transform_indices = @transform_1, window_bounds = array<i64: 1, 2, 1, 8, 128>}, {transform_indices = @transform_2, window_bounds = array<i64: 1, 1, 6, 2, 3, 8>}]} {
    %c0_i32 = arith.constant 0 : i32
    %0 = arith.cmpi eq, %arg2, %c0_i32 : i32
    %1 = arith.extui %0 : i1 to i32
    %c0_i32_0 = arith.constant 0 : i32
    %2 = arith.cmpi ne, %1, %c0_i32_0 : i32
    scf.if %2 {
      %cst_92 = arith.constant 0.000000e+00 : f32
      %87 = vector.broadcast %cst_92 : f32 to vector<6x2x3x8xf32>
      %c0_93 = arith.constant 0 : index
      %c0_94 = arith.constant 0 : index
      %c0_95 = arith.constant 0 : index
      %c0_96 = arith.constant 0 : index
      %c0_97 = arith.constant 0 : index
      %c0_98 = arith.constant 0 : index
      %88 = vector.load %arg5[%c0_93, %c0_94, %c0_95, %c0_96, %c0_97, %c0_98] : memref<1x1x6x2x3x8xf32, #tpu.memory_space<vmem>>, vector<1x1x6x2x3x8xf32>
      %89 = vector.shape_cast %88 : vector<1x1x6x2x3x8xf32> to vector<6x2x3x8xf32>
      %90 = vector.shape_cast %87 : vector<6x2x3x8xf32> to vector<1x1x6x2x3x8xf32>
      tpu.vector_store %arg5[%c0_93, %c0_94, %c0_95, %c0_96, %c0_97, %c0_98], %90 {strides = array<i32>} : memref<1x1x6x2x3x8xf32, #tpu.memory_space<vmem>>, vector<1x1x6x2x3x8xf32>,
    } else {
    }
    %c0 = arith.constant 0 : index
    %c0_1 = arith.constant 0 : index
    %c0_2 = arith.constant 0 : index
    %c0_3 = arith.constant 0 : index
    %c0_4 = arith.constant 0 : index
    %c0_5 = arith.constant 0 : index
    %3 = vector.load %arg3[%c0, %c0_1, %c0_2, %c0_3, %c0_4, %c0_5] : memref<1x1x2x3x8x128xf32, #tpu.memory_space<vmem>>, vector<1x1x2x3x8x128xf32>
    %4 = vector.shape_cast %3 : vector<1x1x2x3x8x128xf32> to vector<2x3x8x128xf32>
    %c0_6 = arith.constant 0 : index
    %c0_7 = arith.constant 0 : index
    %c0_8 = arith.constant 0 : index
    %c0_9 = arith.constant 0 : index
    %c0_10 = arith.constant 0 : index
    %5 = vector.load %arg4[%c0_6, %c0_7, %c0_8, %c0_9, %c0_10] : memref<1x2x1x8x128xf32, #tpu.memory_space<vmem>>, vector<1x2x1x8x128xf32>
    %6 = vector.shape_cast %5 : vector<1x2x1x8x128xf32> to vector<2x1x8x128xf32>
    %7 = vector.shape_cast %6 : vector<2x1x8x128xf32> to vector<2x1x8x128xf32>
    %8 = vector.broadcast %7 : vector<2x1x8x128xf32> to vector<2x3x8x128xf32>
    %9 = arith.negf %4 : vector<2x3x8x128xf32>
    %10 = math.exp %9 : vector<2x3x8x128xf32>
    %cst = arith.constant 1.000000e+00 : f32
    %11 = vector.broadcast %cst : f32 to vector<2x3x8x128xf32>
    %12 = arith.addf %11, %10 : vector<2x3x8x128xf32>
    %13 = arith.divf %11, %12 : vector<2x3x8x128xf32>
    %cst_11 = arith.constant 0.000000e+00 : f32
    %14 = vector.broadcast %cst_11 : f32 to vector<2x3x8x128xf32>
    %15 = arith.maximumf %4, %14 : vector<2x3x8x128xf32>
    %16 = arith.mulf %4, %8 : vector<2x3x8x128xf32>
    %17 = arith.subf %15, %16 : vector<2x3x8x128xf32>
    %cst_12 = arith.constant 1.000000e+00 : f32
    %18 = vector.broadcast %cst_12 : f32 to vector<2x3x8x128xf32>
    %19 = arith.subf %18, %13 : vector<2x3x8x128xf32>
    %20 = arith.maximumf %13, %19 : vector<2x3x8x128xf32>
    %21 = math.log %20 : vector<2x3x8x128xf32>
    %22 = arith.subf %17, %21 : vector<2x3x8x128xf32>
    %23 = arith.mulf %13, %8 : vector<2x3x8x128xf32>
    %cst_13 = arith.constant 1.000000e+00 : f32
    %24 = vector.broadcast %cst_13 : f32 to vector<2x3x8x128xf32>
    %25 = arith.subf %24, %13 : vector<2x3x8x128xf32>
    %cst_14 = arith.constant 1.000000e+00 : f32
    %26 = vector.broadcast %cst_14 : f32 to vector<2x3x8x128xf32>
    %27 = arith.subf %26, %8 : vector<2x3x8x128xf32>
    %28 = arith.mulf %25, %27 : vector<2x3x8x128xf32>
    %29 = arith.addf %23, %28 : vector<2x3x8x128xf32>
    %cst_15 = arith.constant 1.000000e+00 : f32
    %30 = vector.broadcast %cst_15 : f32 to vector<2x3x8x128xf32>
    %31 = arith.subf %30, %29 : vector<2x3x8x128xf32>
    %32 = arith.mulf %31, %31 : vector<2x3x8x128xf32>
    %33 = arith.mulf %22, %32 : vector<2x3x8x128xf32>
    %cst_16 = arith.constant -5.000000e-01 : f32
    %34 = vector.broadcast %cst_16 : f32 to vector<2x3x8x128xf32>
    %35 = arith.mulf %34, %8 : vector<2x3x8x128xf32>
    %cst_17 = arith.constant 7.500000e-01 : f32
    %36 = vector.broadcast %cst_17 : f32 to vector<2x3x8x128xf32>
    %37 = arith.addf %36, %35 : vector<2x3x8x128xf32>
    %38 = arith.mulf %33, %37 : vector<2x3x8x128xf32>
    %cst_18 = arith.constant 0.000000e+00 : f32
    %39 = vector.broadcast %cst_18 : f32 to vector<2x3x8x128xf32>
    %40 = arith.cmpf ogt, %4, %39 : vector<2x3x8x128xf32>
    %41 = arith.extui %40 : vector<2x3x8x128xi1> to vector<2x3x8x128xi32>
    %42 = arith.sitofp %41 : vector<2x3x8x128xi32> to vector<2x3x8x128xf32>
    %c0_19 = arith.constant 0 : index
    %c0_20 = arith.constant 0 : index
    %c0_21 = arith.constant 0 : index
    %c0_22 = arith.constant 0 : index
    %c0_23 = arith.constant 0 : index
    %c0_24 = arith.constant 0 : index
    %43 = vector.load %arg5[%c0_19, %c0_20, %c0_21, %c0_22, %c0_23, %c0_24] : memref<1x1x6x2x3x8xf32, #tpu.memory_space<vmem>>, vector<1x1x1x2x3x8xf32>
    %44 = vector.shape_cast %43 : vector<1x1x1x2x3x8xf32> to vector<2x3x8xf32>
    %cst_25 = arith.constant dense<0.000000e+00> : vector<2x3x8xf32>
    %45 = vector.multi_reduction <add>, %38, %cst_25 [3] : vector<2x3x8x128xf32> to vector<2x3x8xf32>
    %46 = arith.addf %44, %45 : vector<2x3x8xf32>
    %c0_26 = arith.constant 0 : index
    %c0_27 = arith.constant 0 : index
    %c0_28 = arith.constant 0 : index
    %c0_29 = arith.constant 0 : index
    %c0_30 = arith.constant 0 : index
    %c0_31 = arith.constant 0 : index
    %47 = vector.load %arg5[%c0_26, %c0_27, %c0_28, %c0_29, %c0_30, %c0_31] : memref<1x1x6x2x3x8xf32, #tpu.memory_space<vmem>>, vector<1x1x1x2x3x8xf32>
    %48 = vector.shape_cast %47 : vector<1x1x1x2x3x8xf32> to vector<2x3x8xf32>
    %49 = vector.shape_cast %46 : vector<2x3x8xf32> to vector<1x1x1x2x3x8xf32>
    tpu.vector_store %arg5[%c0_26, %c0_27, %c0_28, %c0_29, %c0_30, %c0_31], %49 {strides = array<i32>} : memref<1x1x6x2x3x8xf32, #tpu.memory_space<vmem>>, vector<1x1x1x2x3x8xf32>,
    %c0_32 = arith.constant 0 : index
    %c0_33 = arith.constant 0 : index
    %c1 = arith.constant 1 : index
    %c0_34 = arith.constant 0 : index
    %c0_35 = arith.constant 0 : index
    %c0_36 = arith.constant 0 : index
    %50 = vector.load %arg5[%c0_32, %c0_33, %c1, %c0_34, %c0_35, %c0_36] : memref<1x1x6x2x3x8xf32, #tpu.memory_space<vmem>>, vector<1x1x1x2x3x8xf32>
    %51 = vector.shape_cast %50 : vector<1x1x1x2x3x8xf32> to vector<2x3x8xf32>
    %cst_37 = arith.constant dense<0.000000e+00> : vector<2x3x8xf32>
    %52 = vector.multi_reduction <add>, %23, %cst_37 [3] : vector<2x3x8x128xf32> to vector<2x3x8xf32>
    %53 = arith.addf %51, %52 : vector<2x3x8xf32>
    %c0_38 = arith.constant 0 : index
    %c0_39 = arith.constant 0 : index
    %c1_40 = arith.constant 1 : index
    %c0_41 = arith.constant 0 : index
    %c0_42 = arith.constant 0 : index
    %c0_43 = arith.constant 0 : index
    %54 = vector.load %arg5[%c0_38, %c0_39, %c1_40, %c0_41, %c0_42, %c0_43] : memref<1x1x6x2x3x8xf32, #tpu.memory_space<vmem>>, vector<1x1x1x2x3x8xf32>
    %55 = vector.shape_cast %54 : vector<1x1x1x2x3x8xf32> to vector<2x3x8xf32>
    %56 = vector.shape_cast %53 : vector<2x3x8xf32> to vector<1x1x1x2x3x8xf32>
    tpu.vector_store %arg5[%c0_38, %c0_39, %c1_40, %c0_41, %c0_42, %c0_43], %56 {strides = array<i32>} : memref<1x1x6x2x3x8xf32, #tpu.memory_space<vmem>>, vector<1x1x1x2x3x8xf32>,
    %c0_44 = arith.constant 0 : index
    %c0_45 = arith.constant 0 : index
    %c2 = arith.constant 2 : index
    %c0_46 = arith.constant 0 : index
    %c0_47 = arith.constant 0 : index
    %c0_48 = arith.constant 0 : index
    %57 = vector.load %arg5[%c0_44, %c0_45, %c2, %c0_46, %c0_47, %c0_48] : memref<1x1x6x2x3x8xf32, #tpu.memory_space<vmem>>, vector<1x1x1x2x3x8xf32>
    %58 = vector.shape_cast %57 : vector<1x1x1x2x3x8xf32> to vector<2x3x8xf32>
    %cst_49 = arith.constant dense<0.000000e+00> : vector<2x3x8xf32>
    %59 = vector.multi_reduction <add>, %13, %cst_49 [3] : vector<2x3x8x128xf32> to vector<2x3x8xf32>
    %60 = arith.addf %58, %59 : vector<2x3x8xf32>
    %c0_50 = arith.constant 0 : index
    %c0_51 = arith.constant 0 : index
    %c2_52 = arith.constant 2 : index
    %c0_53 = arith.constant 0 : index
    %c0_54 = arith.constant 0 : index
    %c0_55 = arith.constant 0 : index
    %61 = vector.load %arg5[%c0_50, %c0_51, %c2_52, %c0_53, %c0_54, %c0_55] : memref<1x1x6x2x3x8xf32, #tpu.memory_space<vmem>>, vector<1x1x1x2x3x8xf32>
    %62 = vector.shape_cast %61 : vector<1x1x1x2x3x8xf32> to vector<2x3x8xf32>
    %63 = vector.shape_cast %60 : vector<2x3x8xf32> to vector<1x1x1x2x3x8xf32>
    tpu.vector_store %arg5[%c0_50, %c0_51, %c2_52, %c0_53, %c0_54, %c0_55], %63 {strides = array<i32>} : memref<1x1x6x2x3x8xf32, #tpu.memory_space<vmem>>, vector<1x1x1x2x3x8xf32>,
    %c0_56 = arith.constant 0 : index
    %c0_57 = arith.constant 0 : index
    %c3 = arith.constant 3 : index
    %c0_58 = arith.constant 0 : index
    %c0_59 = arith.constant 0 : index
    %c0_60 = arith.constant 0 : index
    %64 = vector.load %arg5[%c0_56, %c0_57, %c3, %c0_58, %c0_59, %c0_60] : memref<1x1x6x2x3x8xf32, #tpu.memory_space<vmem>>, vector<1x1x1x2x3x8xf32>
    %65 = vector.shape_cast %64 : vector<1x1x1x2x3x8xf32> to vector<2x3x8xf32>
    %cst_61 = arith.constant dense<0.000000e+00> : vector<2x1x8xf32>
    %66 = vector.multi_reduction <add>, %6, %cst_61 [3] : vector<2x1x8x128xf32> to vector<2x1x8xf32>
    %67 = vector.broadcast %66 : vector<2x1x8xf32> to vector<2x3x8xf32>
    %68 = arith.addf %65, %67 : vector<2x3x8xf32>
    %c0_62 = arith.constant 0 : index
    %c0_63 = arith.constant 0 : index
    %c3_64 = arith.constant 3 : index
    %c0_65 = arith.constant 0 : index
    %c0_66 = arith.constant 0 : index
    %c0_67 = arith.constant 0 : index
    %69 = vector.load %arg5[%c0_62, %c0_63, %c3_64, %c0_65, %c0_66, %c0_67] : memref<1x1x6x2x3x8xf32, #tpu.memory_space<vmem>>, vector<1x1x1x2x3x8xf32>
    %70 = vector.shape_cast %69 : vector<1x1x1x2x3x8xf32> to vector<2x3x8xf32>
    %71 = vector.shape_cast %68 : vector<2x3x8xf32> to vector<1x1x1x2x3x8xf32>
    tpu.vector_store %arg5[%c0_62, %c0_63, %c3_64, %c0_65, %c0_66, %c0_67], %71 {strides = array<i32>} : memref<1x1x6x2x3x8xf32, #tpu.memory_space<vmem>>, vector<1x1x1x2x3x8xf32>,
    %c0_68 = arith.constant 0 : index
    %c0_69 = arith.constant 0 : index
    %c4 = arith.constant 4 : index
    %c0_70 = arith.constant 0 : index
    %c0_71 = arith.constant 0 : index
    %c0_72 = arith.constant 0 : index
    %72 = vector.load %arg5[%c0_68, %c0_69, %c4, %c0_70, %c0_71, %c0_72] : memref<1x1x6x2x3x8xf32, #tpu.memory_space<vmem>>, vector<1x1x1x2x3x8xf32>
    %73 = vector.shape_cast %72 : vector<1x1x1x2x3x8xf32> to vector<2x3x8xf32>
    %74 = arith.mulf %42, %8 : vector<2x3x8x128xf32>
    %cst_73 = arith.constant dense<0.000000e+00> : vector<2x3x8xf32>
    %75 = vector.multi_reduction <add>, %74, %cst_73 [3] : vector<2x3x8x128xf32> to vector<2x3x8xf32>
    %76 = arith.addf %73, %75 : vector<2x3x8xf32>
    %c0_74 = arith.constant 0 : index
    %c0_75 = arith.constant 0 : index
    %c4_76 = arith.constant 4 : index
    %c0_77 = arith.constant 0 : index
    %c0_78 = arith.constant 0 : index
    %c0_79 = arith.constant 0 : index
    %77 = vector.load %arg5[%c0_74, %c0_75, %c4_76, %c0_77, %c0_78, %c0_79] : memref<1x1x6x2x3x8xf32, #tpu.memory_space<vmem>>, vector<1x1x1x2x3x8xf32>
    %78 = vector.shape_cast %77 : vector<1x1x1x2x3x8xf32> to vector<2x3x8xf32>
    %79 = vector.shape_cast %76 : vector<2x3x8xf32> to vector<1x1x1x2x3x8xf32>
    tpu.vector_store %arg5[%c0_74, %c0_75, %c4_76, %c0_77, %c0_78, %c0_79], %79 {strides = array<i32>} : memref<1x1x6x2x3x8xf32, #tpu.memory_space<vmem>>, vector<1x1x1x2x3x8xf32>,
    %c0_80 = arith.constant 0 : index
    %c0_81 = arith.constant 0 : index
    %c5 = arith.constant 5 : index
    %c0_82 = arith.constant 0 : index
    %c0_83 = arith.constant 0 : index
    %c0_84 = arith.constant 0 : index
    %80 = vector.load %arg5[%c0_80, %c0_81, %c5, %c0_82, %c0_83, %c0_84] : memref<1x1x6x2x3x8xf32, #tpu.memory_space<vmem>>, vector<1x1x1x2x3x8xf32>
    %81 = vector.shape_cast %80 : vector<1x1x1x2x3x8xf32> to vector<2x3x8xf32>
    %cst_85 = arith.constant dense<0.000000e+00> : vector<2x3x8xf32>
    %82 = vector.multi_reduction <add>, %42, %cst_85 [3] : vector<2x3x8x128xf32> to vector<2x3x8xf32>
    %83 = arith.addf %81, %82 : vector<2x3x8xf32>
    %c0_86 = arith.constant 0 : index
    %c0_87 = arith.constant 0 : index
    %c5_88 = arith.constant 5 : index
    %c0_89 = arith.constant 0 : index
    %c0_90 = arith.constant 0 : index
    %c0_91 = arith.constant 0 : index
    %84 = vector.load %arg5[%c0_86, %c0_87, %c5_88, %c0_89, %c0_90, %c0_91] : memref<1x1x6x2x3x8xf32, #tpu.memory_space<vmem>>, vector<1x1x1x2x3x8xf32>
    %85 = vector.shape_cast %84 : vector<1x1x1x2x3x8xf32> to vector<2x3x8xf32>
    %86 = vector.shape_cast %83 : vector<2x3x8xf32> to vector<1x1x1x2x3x8xf32>
    tpu.vector_store %arg5[%c0_86, %c0_87, %c5_88, %c0_89, %c0_90, %c0_91], %86 {strides = array<i32>} : memref<1x1x6x2x3x8xf32, #tpu.memory_space<vmem>>, vector<1x1x1x2x3x8xf32>,
    return
  }
  func.func @transform_0(%arg0: i32, %arg1: i32, %arg2: i32) -> (i32, i32, i32, i32, i32, i32) {
    %c0_i32 = arith.constant 0 : i32
    %c0_i32_0 = arith.constant 0 : i32
    %c0_i32_1 = arith.constant 0 : i32
    %c0_i32_2 = arith.constant 0 : i32
    return %arg0, %arg1, %c0_i32, %c0_i32_0, %c0_i32_1, %arg2 : i32, i32, i32, i32, i32, i32
  }
  func.func @transform_1(%arg0: i32, %arg1: i32, %arg2: i32) -> (i32, i32, i32, i32, i32) {
    %c0_i32 = arith.constant 0 : i32
    %c0_i32_0 = arith.constant 0 : i32
    %c0_i32_1 = arith.constant 0 : i32
    %c0_i32_2 = arith.constant 0 : i32
    return %arg0, %c0_i32, %c0_i32_0, %c0_i32_1, %arg2 : i32, i32, i32, i32, i32
  }
  func.func @transform_2(%arg0: i32, %arg1: i32, %arg2: i32) -> (i32, i32, i32, i32, i32, i32) {
    %c0_i32 = arith.constant 0 : i32
    %c0_i32_0 = arith.constant 0 : i32
    %c0_i32_1 = arith.constant 0 : i32
    %c0_i32_2 = arith.constant 0 : i32
    %c0_i32_3 = arith.constant 0 : i32
    return %arg0, %arg1, %c0_i32, %c0_i32_0, %c0_i32_1, %c0_i32_2 : i32, i32, i32, i32, i32, i32
  }
}

</mosaic_0001>

<bundles_post_ra>
// kernel: tpu_custom_call.1
= control target key start
LH: loop header
LB: loop body
LE: loop exit
PB: predicated region body
PF: predicated region fallthrough
CT: control target
= control target key end

     0   :  { %7 = vsyncpa [#allocation3], 0  ;;  %s1686_s0 = inlined_call_operand.hbm [shape: f32[2,2,2,3,8,128], index: 0, kind: input, shape index: {}]   ;;  %s1687_s1 = inlined_call_operand.hbm [shape: f32[2,2,1,8,128], index: 1, kind: input, shape index: {}]   ;;  %s1688_s2 = inlined_call_operand.vmem [shape: f32[2,2,6,2,3,8], index: 2, kind: output, shape index: {}]  }
   0x1   :  { %9 = vsyncpa [#allocation3 + $0x1], 0 }
   0x2   :  { %10 = vsyncpa [#allocation5], 0 }
   0x3   :  { %12 = vsyncpa [#allocation5 + $0x1], 0  ;;  %s1221_s9 = smov 0   ;;  %s1223_s10 = smov 0  }
   0x4   :  { %s1225_s11 = smov 0   ;;  %s1227_s12 = smov 0  }
   0x5   :  { %s1229_s13 = smov 0   ;;  %s1231_s14 = smov 0  }
   0x6   :  { %s1233_s15 = smov 0   ;;  %s1235_s16 = smov 0  }
   0x7   :  { %s1237_s17 = smov 0   ;;  %s1239_s18 = smov 0  }
   0x8   :  { %s1241_s19 = smov 0  }
   0x9 LB: > { %1692 = sst [smem:[#allocation8_spill]] %s1191_s17  ;;  %s858_s20 = sadd.s32 4294967295, %s1199_s19   ;;  %s1199_s19 = sphi %s1241_s19, %s18_s19   ;;  %s1195_s18 = sphi %s1239_s18, %s1712_s18   ;;  %s1191_s17 = sphi %s1237_s17, %s1703_s17   ;;  %s1187_s16 = sphi %s1235_s16, %s1711_s16   ;;  %s1183_s15 = sphi %s1233_s15, %s1702_s15   ;;  %s1179_s14 = sphi %s1231_s14, %s1710_s14   ;;  %s1175_s13 = sphi %s1229_s13, %s1709_s13   ;;  %s1171_s12 = sphi %s1227_s12, %s1708_s12   ;;  %s1167_s11 = sphi %s1225_s11, %s1707_s11   ;;  %s1163_s10 = sphi %s1223_s10, %s1706_s10   ;;  %s1159_s9 = sphi %s1221_s9, %s1705_s9  }
   0xa   : > { %s33_s21 = sadd.s32 1, %s1191_s17  ;;  %s37_s22 = sadd.s32 1, %s1195_s18 }
   0xb   : > { %p35_p0 = scmp.ge.s32.totalorder %s33_s21, 2  ;;  %s48_s23 = sadd.s32 1, %s1179_s14 }
   0xc   : > { %p55_p1 = scmp.ne.s32.totalorder %s1179_s14, %s1175_s13  ;;  %p56_p2 = scmp.eq.s32.totalorder %s1199_s19, 0 }
   0xd   : > { %s1714_s21 = smov (%p35_p0, %s33_s21), 0  ;;  %s1716_s22 = smov (!%p35_p0, %s37_s22), %s1195_s18 }
   0xe   : > { %1693 = sst [smem:[#allocation9_spill]] %s1714_s21  ;;  %s42_s24 = ssub.s32 %s1191_s17, %s1714_s21 }
   0xf   : > { %p39_p3 = scmp.ge.s32.totalorder %s1716_s22, 2  ;;  %p61_p4 = scmp.ne.s32.totalorder %s1175_s13, %s1171_s12 }
  0x10   : > { %p1289_p5 = por %p56_p2, %p55_p1  ;;  %p1293_p6 = scmp.eq.s32.totalorder %s858_s20, 0 }
  0x11   : > { %s1718_s22 = smov (%p39_p3, %s1716_s22), 0  ;;  %p921_p8 = scmp.lt.s32.totalorder %s1199_s19, 4 }
  0x12   : > { %1696 = sst [smem:[#allocation10_spill]] %s1718_s22  ;;  %p1301_p7 = por %p1293_p6, %p61_p4 }
  0x13   : > { %s1307_s28 = ssub.s32 %s1195_s18, %s1718_s22  ;;  %s141_s30 = sand.u32 1, %s1179_s14  }
  0x14   : > { %s43_s29 = sor.u32 %s42_s24, %s1307_s28  ;;  %p74_p9 = scmp.eq.s32.totalorder %s1307_s28, 0 }
  0x15   : > { %p46_p10 = scmp.eq.s32.totalorder %s43_s29, 0  ;;  %s904_s3 = smul.u32 48, %s141_s30 }
  0x16   : > { %s905_s5 = smul.u32 6, %s1191_s17  ;;  %p1322_p11 = pnand %p921_p8, %p1289_p5 }
  0x17   : > { %s1314_s4 = scalar_select %p46_p10, %s1179_s14, %s48_s23  }
  0x18   : > { %s906_s6 = smul.u32 12, %s1195_s18  ;;  %s145_s7 = scalar_lea.vmem [#allocation2], %s904_s3 }
  0x19   : > { %s155_s8 = sshll.u32 %s145_s7, 4  ;;  %s142_s23 = scalar_lea.sflag [#allocation3], %s141_s30  ;;  %s156_s8 = int_to_ptr.vmem [resolvable:$true] %s155_s8 }
  0x1a   : > { %s152_s20 = sadd.s32 %s906_s6, %s905_s5  ;;  %p1051_p12 = pneg %p1322_p11 }
  0x1b   : > { %s862_s24 = sshll.u32 %s152_s20, 7  ;;  %s1062_s17 = scalar_lea.vmem %s156_s8, 768 }
  0x1c   : > { %s154_s21 = scalar_lea.hbm %s1686_s0, %s862_s24  ;;  %p1063_p13 = scmp.ne.s32.totalorder %s156_s8, %s1062_s17 }
  0x1d   : > { %s1201_s25 = smov [#allocation2]  }
  0x1e   : > { %p1065_p0 = pnand %p1063_p13, %p1051_p12  ;;  %s1067_s3 = sshll.u32 %s1201_s25, 4  ;;  %s1068_s3 = int_to_ptr.vmem [resolvable:$false] %s1067_s3 }
  0x1f   : > { %s1069_s7 = scalar_lea.vmem %s1068_s3, 1536  ;;  %p1070_p3 = scmp.lt.s32.totalorder %s156_s8, %s1068_s3 }
  0x20   : > { %p1066_p1 = pneg %p1065_p0  ;;  %p1071_p4 = scmp.lt.s32.totalorder %s1069_s7, %s1062_s17 }
  0x22   : > { %p1072_p5 = por %p1071_p4, %p1070_p3 }
  0x24   : > { %p1073_p10 = pnand %p1072_p5, %p1066_p1 }
  0x26   : > { %1076 = shalt.err (!%p1073_p10)
}
  0x27   : > { %s1202_s5 = smov 128   ;;  %s1203_s22 = smov 8  }
  0x28   : > { %917 = dma.hbm_to_vmem [thread:$0]  (!%p1322_p11), %s154_s21, 768, %s156_s8, %s142_s23, %s1202_s5, %s1202_s5, %s1203_s22  }
  0x29   : > { %p866_p12 = scmp.ge.s32.totalorder %s1199_s19, 1  ;;  %p185_p13 = scmp.lt.s32.totalorder %s1199_s19, 5 }
  0x2a   : > { %s76_s30 = sadd.s32 1, %s1167_s11  ;;  %p83_p1 = scmp.ne.s32.totalorder %s1167_s11, %s1163_s10 }
  0x2b   : > { %p1338_p0 = pnand %p866_p12, %p185_p13  ;;  %p89_p3 = scmp.ne.s32.totalorder %s1163_s10, %s1159_s9 }
  0x2c   : > { %s1346_s6 = scalar_select %p74_p9, %s1167_s11, %s76_s30  }
  0x2d   : > { %s165_s20 = sand.u32 1, %s1167_s11   ;;  %s903_s24 = sshll.u32 %s1195_s18, 8 }
  0x2e   : > { %p85_p4 = por %p83_p1, %p56_p2  ;;  %p1358_p5 = por %p89_p3, %p1293_p6 }
  0x2f   : > { %s863_s8 = sshll.u32 %s165_s20, 4  ;;  %s176_s23 = scalar_lea.hbm %s1687_s1, %s903_s24 }
  0x30   : > { %s169_s25 = scalar_lea.vmem [#allocation4], %s863_s8  ;;  %p1367_p9 = pnand %p921_p8, %p85_p4 }
  0x31   : > { %s177_s28 = sshll.u32 %s169_s25, 4  ;;  %s166_s9 = scalar_lea.sflag [#allocation5], %s165_s20  ;;  %s178_s28 = int_to_ptr.vmem [resolvable:$true] %s177_s28 }
  0x32   : > { %p1079_p2 = pneg %p1367_p9  ;;  %s1090_s26 = scalar_lea.vmem %s178_s28, 256 }
  0x33   : > { %p1091_p6 = scmp.ne.s32.totalorder %s178_s28, %s1090_s26  ;;  %s1204_s7 = smov [#allocation4]  }
  0x34   : > { %s1095_s30 = sshll.u32 %s1204_s7, 4  ;;  %s1096_s30 = int_to_ptr.vmem [resolvable:$false] %s1095_s30 }
  0x35   : > { %p1093_p11 = pnand %p1091_p6, %p1079_p2  ;;  %s1097_s24 = scalar_lea.vmem %s1096_s30, 512 }
  0x36   : > { %p1098_p12 = scmp.lt.s32.totalorder %s178_s28, %s1096_s30  ;;  %p1099_p13 = scmp.lt.s32.totalorder %s1097_s24, %s1090_s26 }
  0x37   : > { %p1094_p10 = pneg %p1093_p11 }
  0x38   : > { %p1100_p1 = por %p1099_p13, %p1098_p12 }
  0x3a   : > { %p1101_p8 = pnand %p1100_p1, %p1094_p10 }
  0x3c   : > { %1104 = shalt.err (!%p1101_p8)
}
  0x3d   : > { %920 = dma.hbm_to_vmem [thread:$0]  (!%p1367_p9), %s176_s23, 256, %s178_s28, %s166_s9, %s1202_s5, %s1202_s5, %s1203_s22  }
  0x3e   : > { %189 = sbr.rel (%p1338_p0) target bundleno = 293 (0x125), region = 28  ;;  %s191_s20 = sand.u32 (!%p1338_p0), 1, %s1175_s13  }
  0x3f   : > { %s907_s8 = smul.u32 (!%p1338_p0), 48, %s191_s20  ;;  %s192_s12 = scalar_lea.sflag (!%p1338_p0), [#allocation3], %s191_s20 }
  0x41   : > { %s195_s29 = scalar_lea.vmem (!%p1338_p0), [#allocation2], %s907_s8 }
  0x43   : > { %1150 = dma.done.wait (%p1301_p7), %s192_s12, 768  }
  0x44   : > { %1152 = vsyncadd (%p1301_p7), %s192_s12, 4294966528  ;;  %s200_s25 = sand.u32 1, %s1163_s10  }
  0x45   : > { %s867_s3 = sshll.u32 %s200_s25, 4  ;;  %s201_s26 = scalar_lea.sflag [#allocation5], %s200_s25 }
  0x46   : > { %s204_s5 = scalar_lea.vmem [#allocation4], %s867_s3 }
  0x47   : > { %1154 = dma.done.wait (%p1358_p5), %s201_s26, 256  }
  0x48   : > { %1156 = vsyncadd (%p1358_p5), %s201_s26, 4294967040  ;;  %v1390_v0 = vld [vmem:[%s195_s29 + $0x8] sm:$0xff]  ;;  %v1392_v1 = vld [vmem:[%s195_s29] sm:$0xff]  ;;  %v1205_v5 = vmov 0.0   ;;  %p234_p7 = scmp.lt.s32.totalorder %s1187_s16, 1  ;;  %p236_p0 = scmp.lt.s32.totalorder %s1183_s15, 1 }
  0x49   : > { %v1394_v2 = vld [vmem:[%s204_s5] sm:$0xff]  ;;  %vm401_vm0 = vcmp.gt.f32.partialorder %v1390_v0, 0.0  ;;  %v870_v3 = vmul.f32 -1.442695, %v1390_v0  ;;  %vm400_vm1 = vcmp.gt.f32.partialorder %v1392_v1, 0.0  ;;  %v1404_v9 = vld [vmem:[%s195_s29 + $0x18] sm:$0xff] }
  0x4a   : > { %v869_v4 = vmul.f32 -1.442695, %v1392_v1  ;;  %v876_v6 = vsel %vm401_vm0, 1.0, %v1205_v5  ;;  %v875_v7 = vsel %vm400_vm1, 1.0, %v1205_v5  ;;  %v1402_v8 = vld [vmem:[%s195_s29 + $0x20] sm:$0xff]  ;;  %v1409_v13 = vld [vmem:[%s195_s29 + $0x28] sm:$0xff]  ;;  %v310_v60 = vmul.f32 %v1394_v2, %v1392_v1 }
  0x4b   : > { %678 = vadd.xlane.f32.xlu1 %v876_v6  ;;  %1013 = vpow2.f32 %v870_v3  ;;  %676 = vadd.xlane.f32.xlu0 %v875_v7  ;;  %v616_v10 = vmul.f32 %v876_v6, %v1394_v2  ;;  %v615_v11 = vmul.f32 %v875_v7, %v1394_v2  ;;  %v873_v12 = vmul.f32 -1.442695, %v1402_v8  ;;  %v1411_v14 = vld [vmem:[%s195_s29 + $0x10] sm:$0xff]  ;;  %v1413_v15 = vld [vmem:[%s204_s5 + $0x8] sm:$0xff]  ;;  %s1720_s16 = smov (!%p234_p7, %s1187_s16), 1  ;;  %s1722_s15 = smov (!%p236_p0, %s1183_s15), 1 }
  0x4c   : > { %1015 = vpow2.f32 %v869_v4  ;;  %vm404_vm2 = vcmp.gt.f32.partialorder %v1402_v8, 0.0  ;;  %v872_v16 = vmul.f32 -1.442695, %v1404_v9  ;;  %vm403_vm3 = vcmp.gt.f32.partialorder %v1404_v9, 0.0  ;;  %s909_s27 = smul.u32 24, %s1720_s16 }
  0x4d   : > { %1017 = vpow2.f32 %v873_v12  ;;  %v879_v17 = vsel %vm404_vm2, 1.0, %v1205_v5  ;;  %v878_v18 = vsel %vm403_vm3, 1.0, %v1205_v5  ;;  %v874_v19 = vmul.f32 -1.442695, %v1409_v13  ;;  %s908_s22 = smul.u32 12, %s1722_s15 }
  0x4e   : > { %1019 = vpow2.f32 %v872_v16  ;;  %v871_v20 = vmul.f32 -1.442695, %v1411_v14  ;;  %v619_v21 = vmul.f32 %v879_v17, %v1413_v15  ;;  %v618_v22 = vmul.f32 %v878_v18, %v1413_v15 }
  0x4f   : > { %623 = vadd.xlane.f32.xlu1 %v616_v10  ;;  %621 = vadd.xlane.f32.xlu0 %v615_v11  ;;  %1021 = vpow2.f32 %v874_v19  ;;  %v1425_v43 = vsub.f32 1.0, %v1394_v2  ;;  %v1428_v47 = vsub.f32 1.0, %v1413_v15  ;;  %vm405_vm4 = vcmp.gt.f32.partialorder %v1409_v13, 0.0  ;;  %s240_s16 = sadd.s32 %s909_s27, %s908_s22 }
  0x50   : > { %1023 = vpow2.f32 %v871_v20  ;;  %vm402_vm5 = vcmp.gt.f32.partialorder %v1411_v14, 0.0  ;;  %v1440_v52 = vsel %vm405_vm4, 1.0, %v1205_v5  ;;  %v307_v63 = vmax.f32 %v1404_v9, 0.0  ;;  %s868_s15 = sshll.u32 %s240_s16, 2 }
  0x51   : > { %v1455_v59 = vsel %vm402_vm5, 1.0, %v1205_v5  ;;  %v1462_v62 = vmul.f32 %v1440_v52, %v1413_v15  ;;  %v313_v7 = vmul.f32 %v1413_v15, %v1404_v9  ;;  %v304_v16 = vmax.f32 %v1392_v1, 0.0  ;;  %s1486_s23 = scalar_lea.vmem %s1688_s2, %s868_s15 }
  0x52   : > { %vm247_vm6 = vcmask 59392   ;;  %v1477_v9 = vmul.f32 %v1455_v59, %v1394_v2  ;;  %v391_v19 = vmul.f32 -0.5, %v1413_v15  ;;  %v305_v20 = vmax.f32 %v1390_v0, 0.0 }
  0x53   : > { %629 = vadd.xlane.f32.xlu1 %v619_v21  ;;  %627 = vadd.xlane.f32.xlu0 %v618_v22  ;;  %v311_v1 = vmul.f32 %v1394_v2, %v1390_v0  ;;  %v319_v0 = vsub.f32 %v307_v63, %v313_v7  ;;  %v390_v22 = vmul.f32 -0.5, %v1394_v2  ;;  %253 = vst.msk [vmem:[%s1486_s23 + $0x14] sm:$0x7] %vm247_vm6, %v1205_v5  ;;  %248 = vst.msk [vmem:[%s1486_s23] sm:$0x7] %vm247_vm6, %v1205_v5  ;;  %vm466_vm7 = vcmask 1042434  }
  0x54   : > { %249 = vst.msk [vmem:[%s1486_s23 + $0x4] sm:$0x7] %vm247_vm6, %v1205_v5  ;;  %250 = vst.msk [vmem:[%s1486_s23 + $0x8] sm:$0x7] %vm247_vm6, %v1205_v5  ;;  %vm464_vm8 = vcmask 1041409  }
  0x55   : > { %251 = vst.msk [vmem:[%s1486_s23 + $0xc] sm:$0x7] %vm247_vm6, %v1205_v5  ;;  %252 = vst.msk [vmem:[%s1486_s23 + $0x10] sm:$0x7] %vm247_vm6, %v1205_v5 }
  0x56   : > { %254 = vst.msk [vmem:[%s1486_s23 + $0x18] sm:$0x7] %vm247_vm6, %v1205_v5  ;;  %255 = vst.msk [vmem:[%s1486_s23 + $0x1c] sm:$0x7] %vm247_vm6, %v1205_v5 }
  0x57   : > { %684 = vadd.xlane.f32.xlu1 %v879_v17  ;;  %682 = vadd.xlane.f32.xlu0 %v878_v18  ;;  %v308_v17 = vmax.f32 %v1402_v8, 0.0  ;;  %v314_v18 = vmul.f32 %v1413_v15, %v1402_v8  ;;  %256 = vst.msk [vmem:[%s1486_s23 + $0x20] sm:$0x7] %vm247_vm6, %v1205_v5  ;;  %257 = vst.msk [vmem:[%s1486_s23 + $0x24] sm:$0x7] %vm247_vm6, %v1205_v5 }
  0x58   : > { %v1014_v23 = vpop.eup %1013  ;;  %258 = vst.msk [vmem:[%s1486_s23 + $0x28] sm:$0x7] %vm247_vm6, %v1205_v5  ;;  %259 = vst.msk [vmem:[%s1486_s23 + $0x2c] sm:$0x7] %vm247_vm6, %v1205_v5 }
  0x59   : > { %v1016_v24 = vpop.eup %1015  ;;  %v287_v25 = vadd.f32 1.0, %v1014_v23 }
  0x5a   : > { %v1018_v26 = vpop.eup %1017  ;;  %v286_v27 = vadd.f32 1.0, %v1016_v24 }
  0x5b   : > { %v1020_v28 = vpop.eup %1019  ;;  %1025 = vrcp.f32 %v287_v25  ;;  %v290_v29 = vadd.f32 1.0, %v1018_v26 }
  0x5c   : > { %v1022_v30 = vpop.eup %1021  ;;  %1027 = vrcp.f32 %v286_v27  ;;  %v289_v31 = vadd.f32 1.0, %v1020_v28 }
  0x5d   : > { %v1024_v32 = vpop.eup %1023  ;;  %1029 = vrcp.f32 %v290_v29  ;;  %v291_v33 = vadd.f32 1.0, %v1022_v30  ;;  %v316_v30 = vsub.f32 %v304_v16, %v310_v60 }
  0x5e   : > { %1031 = vrcp.f32 %v289_v31  ;;  %v288_v34 = vadd.f32 1.0, %v1024_v32  ;;  %v320_v31 = vsub.f32 %v308_v17, %v314_v18  ;;  %v317_v32 = vsub.f32 %v305_v20, %v311_v1 }
  0x5f   : > { %1033 = vrcp.f32 %v291_v33  ;;  %v309_v33 = vmax.f32 %v1409_v13, 0.0 }
  0x60   : > { %1035 = vrcp.f32 %v288_v34  ;;  %v315_v34 = vmul.f32 %v1413_v15, %v1409_v13 }
  0x68   : > { %v1026_v35 = vpop.eup %1025 }
  0x69   : > { %v1028_v36 = vpop.eup %1027  ;;  %537 = vadd.xlane.f32.xlu1 %v1026_v35  ;;  %v323_v37 = vsub.f32 1.0, %v1026_v35  ;;  %v353_v53 = vmul.f32 %v1026_v35, %v1394_v2 }
  0x6a   : > { %v1030_v38 = vpop.eup %1029  ;;  %535 = vadd.xlane.f32.xlu0 %v1028_v36  ;;  %v322_v39 = vsub.f32 1.0, %v1028_v36  ;;  %v352_v57 = vmul.f32 %v1028_v36, %v1394_v2 }
  0x6b   : > { %v1032_v40 = vpop.eup %1031  ;;  %v329_v41 = vmax.f32 %v1026_v35, %v323_v37  ;;  %v326_v42 = vsub.f32 1.0, %v1030_v38  ;;  %v361_v3 = vmul.f32 %v1425_v43, %v323_v37  ;;  %v356_v11 = vmul.f32 %v1030_v38, %v1413_v15 }
  0x6c   : > { %v328_v44 = vmax.f32 %v1028_v36, %v322_v39  ;;  %v325_v45 = vsub.f32 1.0, %v1032_v40  ;;  %v1431_v48 = vpop.eup %1033  ;;  %v360_v54 = vmul.f32 %v1425_v43, %v322_v39  ;;  %v355_v61 = vmul.f32 %v1032_v40, %v1413_v15 }
  0x6d   : > { %543 = vadd.xlane.f32.xlu1 %v1030_v38  ;;  %1037 = vlog2.f32 %v329_v41  ;;  %v332_v46 = vmax.f32 %v1030_v38, %v326_v42  ;;  %v1435_v50 = vpop.eup %1035  ;;  %v327_v51 = vsub.f32 1.0, %v1431_v48  ;;  %v364_v4 = vmul.f32 %v1428_v47, %v326_v42 }
  0x6e   : > { %541 = vadd.xlane.f32.xlu0 %v1032_v40  ;;  %1039 = vlog2.f32 %v328_v44  ;;  %v331_v49 = vmax.f32 %v1032_v40, %v325_v45  ;;  %v363_v55 = vmul.f32 %v1428_v47, %v325_v45  ;;  %v324_v58 = vsub.f32 1.0, %v1435_v50 }
  0x6f   : > { %1041 = vlog2.f32 %v332_v46  ;;  %v333_v56 = vmax.f32 %v1431_v48, %v327_v51  ;;  %v366_v10 = vadd.f32 %v360_v54, %v352_v57  ;;  %v367_v8 = vadd.f32 %v361_v3, %v353_v53 }
  0x70   : > { %1043 = vlog2.f32 %v331_v49  ;;  %v330_v6 = vmax.f32 %v1435_v50, %v324_v58  ;;  %v369_v12 = vadd.f32 %v363_v55, %v355_v61  ;;  %v370_v21 = vadd.f32 %v364_v4, %v356_v11 }
  0x71   : > { %545 = vadd.xlane.f32.xlu1 %v1431_v48  ;;  %1045 = vlog2.f32 %v333_v56  ;;  %v372_v23 = vsub.f32 1.0, %v366_v10  ;;  %v357_v25 = vmul.f32 %v1431_v48, %v1413_v15  ;;  %v365_v26 = vmul.f32 %v1428_v47, %v327_v51 }
  0x72   : > { %539 = vadd.xlane.f32.xlu0 %v1435_v50  ;;  %1047 = vlog2.f32 %v330_v6  ;;  %v375_v24 = vsub.f32 1.0, %v369_v12  ;;  %v354_v28 = vmul.f32 %v1435_v50, %v1394_v2  ;;  %v362_v29 = vmul.f32 %v1425_v43, %v324_v58 }
  0x73   : > { %v306_v35 = vmax.f32 %v1411_v14, 0.0  ;;  %v373_v37 = vsub.f32 1.0, %v367_v8  ;;  %v376_v38 = vsub.f32 1.0, %v370_v21  ;;  %v312_v40 = vmul.f32 %v1394_v2, %v1411_v14 }
  0x74   : > { %v378_v42 = vmul.f32 %v372_v23, %v372_v23  ;;  %v381_v43 = vmul.f32 %v375_v24, %v375_v24  ;;  %v371_v44 = vadd.f32 %v365_v26, %v357_v25  ;;  %v368_v46 = vadd.f32 %v362_v29, %v354_v28 }
  0x75   : > { %482 = vadd.xlane.f32.xlu1 %v353_v53  ;;  %v393_v49 = vadd.f32 0.75, %v391_v19  ;;  %v392_v50 = vadd.f32 0.75, %v390_v22  ;;  %v379_v53 = vmul.f32 %v373_v37, %v373_v37  ;;  %v321_v55 = vsub.f32 %v309_v33, %v315_v34 }
  0x76   : > { %480 = vadd.xlane.f32.xlu0 %v352_v57  ;;  %v318_v56 = vsub.f32 %v306_v35, %v312_v40  ;;  %v382_v57 = vmul.f32 %v376_v38, %v376_v38  ;;  %v377_v14 = vsub.f32 1.0, %v371_v44  ;;  %v886_v38 = vld [vmem:[%s1486_s23 + $0x14] sm:$0x7] }
  0x78   : > { %v383_v10 = vmul.f32 %v377_v14, %v377_v14  ;;  %v882_v14 = vld [vmem:[%s1486_s23 + $0xc] sm:$0x7] }
  0x79   : > { %488 = vadd.xlane.f32.xlu1 %v356_v11 }
  0x7a   : > { %v1038_v27 = vpop.eup %1037  ;;  %486 = vadd.xlane.f32.xlu0 %v355_v61  ;;  %v374_v61 = vsub.f32 1.0, %v368_v46 }
  0x7b   : > { %v1040_v5 = vpop.eup %1039  ;;  %v337_v13 = vmul.f32 0.6931472, %v1038_v27 }
  0x7c   : > { %v1042_v36 = vpop.eup %1041  ;;  %v335_v39 = vmul.f32 0.6931472, %v1040_v5  ;;  %v380_v17 = vmul.f32 %v374_v61, %v374_v61 }
  0x7d   : > { %v1044_v41 = vpop.eup %1043  ;;  %490 = vadd.xlane.f32.xlu1 %v357_v25  ;;  %v343_v45 = vmul.f32 0.6931472, %v1042_v36  ;;  %v347_v4 = vsub.f32 %v317_v32, %v337_v13 }
  0x7e   : > { %484 = vadd.xlane.f32.xlu0 %v354_v28  ;;  %v341_v47 = vmul.f32 0.6931472, %v1044_v41  ;;  %v346_v48 = vsub.f32 %v316_v30, %v335_v39  ;;  %v1046_v51 = vpop.eup %1045  ;;  %v438_v28 = vlaneseq }
  0x7f   : > { %v350_v58 = vsub.f32 %v320_v31, %v343_v45  ;;  %v345_v60 = vmul.f32 0.6931472, %v1046_v51  ;;  %v1048_v6 = vpop.eup %1047  ;;  %v385_v18 = vmul.f32 %v379_v53, %v347_v4  ;;  %v881_v4 = vld [vmem:[%s1486_s23 + $0x8] sm:$0x7] }
  0x80   : > { %v349_v54 = vsub.f32 %v319_v0, %v341_v47  ;;  %v384_v3 = vmul.f32 %v378_v42, %v346_v48  ;;  %v339_v7 = vmul.f32 0.6931472, %v1048_v6  ;;  %v439_v29 = vand.u32 127, %v438_v28  ;;  %v885_v42 = vld [vmem:[%s1486_s23 + $0x10] sm:$0x7] }
  0x81   : > { %631 = vadd.xlane.f32.xlu1 %v1462_v62  ;;  %v388_v12 = vmul.f32 %v382_v57, %v350_v58  ;;  %v351_v16 = vsub.f32 %v321_v55, %v345_v60  ;;  %v395_v1 = vmul.f32 %v392_v50, %v385_v18 }
  0x82   : > { %625 = vadd.xlane.f32.xlu0 %v1477_v9  ;;  %v387_v63 = vmul.f32 %v381_v43, %v349_v54  ;;  %v394_v62 = vmul.f32 %v392_v50, %v384_v3  ;;  %v348_v19 = vsub.f32 %v318_v56, %v339_v7 }
  0x83   : > { %v398_v20 = vmul.f32 %v393_v49, %v388_v12  ;;  %v389_v9 = vmul.f32 %v383_v10, %v351_v16 }
  0x84   : > { %v397_v11 = vmul.f32 %v393_v49, %v387_v63  ;;  %v386_v8 = vmul.f32 %v380_v17, %v348_v19  ;;  %v894_v19 = vld [vmem:[%s1486_s23 + $0x24] sm:$0x7] }
  0x85   : > { %686 = vadd.xlane.f32.xlu1 %v1440_v52  ;;  %v399_v21 = vmul.f32 %v393_v49, %v389_v9 }
  0x86   : > { %680 = vadd.xlane.f32.xlu0 %v1455_v59  ;;  %v396_v0 = vmul.f32 %v392_v50, %v386_v8 }
  0x89   : > { %426 = vadd.xlane.f32.xlu1 %v397_v11 }
  0x8a   : > { %420 = vadd.xlane.f32.xlu0 %v394_v62 }
  0x8d   : > { %428 = vadd.xlane.f32.xlu1 %v398_v20 }
  0x8e   : > { %422 = vadd.xlane.f32.xlu0 %v395_v1 }
  0x91   : > { %430 = vadd.xlane.f32.xlu1 %v399_v21 }
  0x92   : > { %424 = vadd.xlane.f32.xlu0 %v396_v0  ;;  %v893_v0 = vld [vmem:[%s1486_s23 + $0x20] sm:$0x7] }
  0x95   : > { %592 = vadd.xlane.f32.xlu1 %v1413_v15  ;;  %v441_v15 = vshrl.u32 %v438_v28, 7 }
  0x96   : > { %590 = vadd.xlane.f32.xlu0 %v1394_v2 }
  0x97   : > { %v1557_v31 = vsub.s32 %v439_v29, %v441_v15 }
  0xd4   : > { %v1545_v52 = vpop.xlane.xlu1 %678  ;;  %v1547_v59 = vpop.xlane.xlu0 %676 }
  0xd8   : > { %v1549_v22 = vpop.xlane.xlu1 %623  ;;  %v1551_v23 = vpop.xlane.xlu0 %621 }
  0xd9   : > { %v646_v7 = vrot.slane %v1549_v22, %v1557_v31  ;;  %v642_v10 = vrot.slane %v1551_v23, %v1557_v31  ;;  %v701_v23 = vrot.slane %v1545_v52, %v1557_v31 }
  0xdc   : > { %v630_v24 = vpop.xlane.xlu1 %629  ;;  %v628_v25 = vpop.xlane.xlu0 %627 }
  0xdd   : > { %v658_v61 = vrot.slane %v630_v24, %v1557_v31  ;;  %v654_v63 = vrot.slane %v628_v25, %v1557_v31  ;;  %v697_v24 = vrot.slane %v1547_v59, %v1557_v31  ;;  %v663_v25 = vsel %vm464_vm8, %v646_v7, %v642_v10 }
  0xdf   : > { %v665_v1 = vsel %vm464_vm8, %v658_v61, %v654_v63  ;;  %v889_v63 = vld [vmem:[%s1486_s23 + $0x18] sm:$0x7] }
  0xe0   : > { %v1553_v26 = vpop.xlane.xlu1 %684  ;;  %v1555_v27 = vpop.xlane.xlu0 %682 }
  0xe1   : > { %v713_v8 = vrot.slane %v1553_v26, %v1557_v31  ;;  %v709_v21 = vrot.slane %v1555_v27, %v1557_v31 }
  0xe3   : > { %v720_v59 = vsel %vm464_vm8, %v713_v8, %v709_v21 }
  0xf2   : > { %v538_v30 = vpop.xlane.xlu1 %537 }
  0xf3   : > { %v536_v2 = vpop.xlane.xlu0 %535  ;;  %v560_v35 = vrot.slane %v538_v30, %v1557_v31  ;;  %v898_v30 = vld [vmem:[%s1486_s23 + $0x2c] sm:$0x7] }
  0xf4   : > { %v556_v36 = vrot.slane %v536_v2, %v1557_v31 }
  0xf6   : > { %v544_v5 = vpop.xlane.xlu1 %543  ;;  %v577_v44 = vsel %vm464_vm8, %v560_v35, %v556_v36 }
  0xf7   : > { %v542_v32 = vpop.xlane.xlu0 %541  ;;  %v572_v33 = vrot.slane %v544_v5, %v1557_v31  ;;  %v897_v5 = vld [vmem:[%s1486_s23 + $0x28] sm:$0x7] }
  0xf8   : > { %v568_v34 = vrot.slane %v542_v32, %v1557_v31 }
  0xfa   : > { %v546_v37 = vpop.xlane.xlu1 %545  ;;  %v579_v41 = vsel %vm464_vm8, %v572_v33, %v568_v34  ;;  %v718_v33 = vsel %vm464_vm8, %v701_v23, %v697_v24 }
  0xfb   : > { %v576_v39 = vrot.slane %v546_v37, %v1557_v31  ;;  %v540_v40 = vpop.xlane.xlu0 %539 }
  0xfc   : > { %v564_v43 = vrot.slane %v540_v40, %v1557_v31 }
  0xfd   : > { %v580_v45 = vsel %vm466_vm7, %v576_v39, %v579_v41 }
  0xfe   : > { %v584_v46 = vadd.f32 %v886_v38, %v580_v45  ;;  %v578_v47 = vsel %vm466_vm7, %v564_v43, %v577_v44  ;;  %v483_v48 = vpop.xlane.xlu1 %482 }
  0xff   : > { %v583_v13 = vadd.f32 %v885_v42, %v578_v47  ;;  %v481_v49 = vpop.xlane.xlu0 %480  ;;  %v505_v55 = vrot.slane %v483_v48, %v1557_v31  ;;  %v419_v47 = vld [vmem:[%s1486_s23 + $0x4] sm:$0x7] }
 0x100   : > { %888 = vst.msk [vmem:[%s1486_s23 + $0x14] sm:$0x7] %vm247_vm6, %v584_v46  ;;  %v501_v56 = vrot.slane %v481_v49, %v1557_v31 }
 0x101   : > { %887 = vst.msk [vmem:[%s1486_s23 + $0x10] sm:$0x7] %vm247_vm6, %v583_v13 }
 0x102   : > { %v489_v50 = vpop.xlane.xlu1 %488  ;;  %v522_v11 = vsel %vm464_vm8, %v505_v55, %v501_v56 }
 0x103   : > { %v487_v51 = vpop.xlane.xlu0 %486  ;;  %v517_v53 = vrot.slane %v489_v50, %v1557_v31  ;;  %v418_v50 = vld [vmem:[%s1486_s23] sm:$0x7] }
 0x104   : > { %v513_v54 = vrot.slane %v487_v51, %v1557_v31 }
 0x106   : > { %v491_v57 = vpop.xlane.xlu1 %490  ;;  %v524_v3 = vsel %vm464_vm8, %v517_v53, %v513_v54 }
 0x107   : > { %v521_v58 = vrot.slane %v491_v57, %v1557_v31  ;;  %v485_v60 = vpop.xlane.xlu0 %484 }
 0x108   : > { %v509_v6 = vrot.slane %v485_v60, %v1557_v31 }
 0x109   : > { %v525_v12 = vsel %vm466_vm7, %v521_v58, %v524_v3 }
 0x10a   : > { %v529_v16 = vadd.f32 %v882_v14, %v525_v12  ;;  %v523_v17 = vsel %vm466_vm7, %v509_v6, %v522_v11  ;;  %v632_v62 = vpop.xlane.xlu1 %631  ;;  %v890_v14 = vld [vmem:[%s1486_s23 + $0x1c] sm:$0x7] }
 0x10b   : > { %v528_v18 = vadd.f32 %v881_v4, %v523_v17  ;;  %v662_v20 = vrot.slane %v632_v62, %v1557_v31  ;;  %v626_v9 = vpop.xlane.xlu0 %625 }
 0x10c   : > { %884 = vst.msk [vmem:[%s1486_s23 + $0xc] sm:$0x7] %vm247_vm6, %v529_v16  ;;  %v650_v22 = vrot.slane %v626_v9, %v1557_v31 }
 0x10d   : > { %883 = vst.msk [vmem:[%s1486_s23 + $0x8] sm:$0x7] %vm247_vm6, %v528_v18  ;;  %v666_v26 = vsel %vm466_vm7, %v662_v20, %v665_v1 }
 0x10e   : > { %v670_v27 = vadd.f32 %v894_v19, %v666_v26  ;;  %v664_v28 = vsel %vm466_vm7, %v650_v22, %v663_v25  ;;  %v687_v29 = vpop.xlane.xlu1 %686 }
 0x10f   : > { %v669_v15 = vadd.f32 %v893_v0, %v664_v28  ;;  %v717_v52 = vrot.slane %v687_v29, %v1557_v31  ;;  %v681_v2 = vpop.xlane.xlu0 %680 }
 0x110   : > { %896 = vst.msk [vmem:[%s1486_s23 + $0x24] sm:$0x7] %vm247_vm6, %v670_v27  ;;  %v705_v32 = vrot.slane %v681_v2, %v1557_v31 }
 0x111   : > { %895 = vst.msk [vmem:[%s1486_s23 + $0x20] sm:$0x7] %vm247_vm6, %v669_v15  ;;  %v721_v34 = vsel %vm466_vm7, %v717_v52, %v720_v59 }
 0x112   : > { %v725_v35 = vadd.f32 %v898_v30, %v721_v34  ;;  %v719_v36 = vsel %vm466_vm7, %v705_v32, %v718_v33  ;;  %v427_v37 = vpop.xlane.xlu1 %426 }
 0x113   : > { %v724_v38 = vadd.f32 %v897_v5, %v719_v36  ;;  %v421_v39 = vpop.xlane.xlu0 %420  ;;  %v455_v44 = vrot.slane %v427_v37, %v1557_v31 }
 0x114   : > { %900 = vst.msk [vmem:[%s1486_s23 + $0x2c] sm:$0x7] %vm247_vm6, %v725_v35  ;;  %v443_v46 = vrot.slane %v421_v39, %v1557_v31 }
 0x115   : > { %899 = vst.msk [vmem:[%s1486_s23 + $0x28] sm:$0x7] %vm247_vm6, %v724_v38 }
 0x116   : > { %v429_v40 = vpop.xlane.xlu1 %428 }
 0x117   : > { %v423_v41 = vpop.xlane.xlu0 %422  ;;  %v459_v42 = vrot.slane %v429_v40, %v1557_v31 }
 0x118   : > { %v447_v43 = vrot.slane %v423_v41, %v1557_v31 }
 0x119   : > { %v468_v49 = vsel %vm464_vm8, %v459_v42, %v455_v44 }
 0x11a   : > { %v431_v45 = vpop.xlane.xlu1 %430  ;;  %v465_v53 = vsel %vm464_vm8, %v447_v43, %v443_v46 }
 0x11b   : > { %v463_v48 = vrot.slane %v431_v45, %v1557_v31  ;;  %v425_v13 = vpop.xlane.xlu0 %424 }
 0x11c   : > { %v451_v51 = vrot.slane %v425_v13, %v1557_v31 }
 0x11d   : > { %v469_v54 = vsel %vm466_vm7, %v463_v48, %v468_v49 }
 0x11e   : > { %v473_v55 = vadd.f32 %v469_v54, %v419_v47  ;;  %v467_v56 = vsel %vm466_vm7, %v451_v51, %v465_v53  ;;  %v593_v57 = vpop.xlane.xlu1 %592 }
 0x11f   : > { %v472_v58 = vadd.f32 %v467_v56, %v418_v50  ;;  %v603_v60 = vrot.slane %v593_v57, %v1557_v31  ;;  %v591_v61 = vpop.xlane.xlu0 %590 }
 0x120   : > { %476 = vst.msk [vmem:[%s1486_s23 + $0x4] sm:$0x7] %vm247_vm6, %v473_v55  ;;  %v599_v3 = vrot.slane %v591_v61, %v1557_v31 }
 0x121   : > { %475 = vst.msk [vmem:[%s1486_s23] sm:$0x7] %vm247_vm6, %v472_v58  ;;  %v609_v4 = vadd.f32 %v890_v14, %v603_v60 }
 0x122   : > { %v608_v6 = vadd.f32 %v889_v63, %v599_v3 }
 0x123   : > { %892 = vst.msk [vmem:[%s1486_s23 + $0x1c] sm:$0x7] %vm247_vm6, %v609_v4 }
 0x124   : > { %891 = vst.msk [vmem:[%s1486_s23 + $0x18] sm:$0x7] %vm247_vm6, %v608_v6 }
 0x125 PF: > { %s18_s19 = sadd.s32 1, %s1199_s19   ;;  %s1702_s15 = sld [smem:[#allocation8_spill]] }
 0x126   : > { %p15_p3 = scmp.ge.s32.totalorder %s18_s19, 6   ;;  %s1703_s17 = sld [smem:[#allocation9_spill]] }
 0x127   : > { %s1704_s28 = sld [smem:[#allocation10_spill]]  ;;  %s1705_s9 = smov %s1163_s10 }
 0x128   : > { %s1706_s10 = smov %s1167_s11  ;;  %s1707_s11 = smov %s1346_s6 }
 0x129   : > { %s1708_s12 = smov %s1175_s13  ;;  %s1709_s13 = smov %s1179_s14 }
 0x12a   : > { %s1710_s14 = smov %s1314_s4  ;;  %s1711_s16 = smov %s1195_s18 }
 0x12b   :  { %17 = sbr.rel (!%p15_p3) target bundleno = 9 (0x9), region = 90 }
 0x12d   : > { %s1712_s18 = smov %s1704_s28 }
 0x130   :  { %757 = vsyncpa [#allocation3], 1 }
 0x131   :  { %759 = vsyncpa [#allocation3 + $0x1], 1 }
 0x132   :  { %760 = vsyncpa [#allocation5], 1 }
 0x133   :  { %762 = vsyncpa [#allocation5 + $0x1], 1 }

</bundles_post_ra>
